<compile_context>
chip_gen: v7x
topology: tpu7x:2x2x1
jax: 0.10.0
libtpu: 0.0.40
codegen_flags: <defaults>
</compile_context>

<pallas_src>
import jax
import jax.numpy as jnp
from jax.experimental import pallas as pl
from jax.experimental.pallas import tpu as pltpu


def _decoder_kernel(u_ref, i_ref, q_ref, s_ref, o_ref):
    # u_ref, i_ref: (TILE_B, D)
    # q_ref:        (D, C*D)   -- combine weight W already folded into P
    # s_ref:        (C*D, C)   -- constant 0/1 segment-sum matrix
    # o_ref:        (TILE_B, C)
    num_classes = o_ref.shape[-1]

    u = u_ref[...]
    it = i_ref[...]

    # One lane-dense MXU matmul covering all classes at once: (TILE_B, C*D)
    t = jnp.dot(u, q_ref[...], preferred_element_type=jnp.float32)

    # Replicate ifeat along lanes once per class (single lane concat).
    it_rep = jnp.concatenate([it] * num_classes, axis=-1)         # (TILE_B, C*D)

    # Per-class contraction over D as a small MXU matmul against the constant
    # segment matrix: o[a, c] = sum_j t[a, c*D + j] * ifeat[a, j].
    o_ref[...] = jnp.dot(t * it_rep, s_ref[...],
                         preferred_element_type=jnp.float32).astype(o_ref.dtype)


def dense_bi_decoder(ufeat, ifeat, P, combine_weight, *, tile_b=None):
    """
    ufeat, ifeat   : (B, D) float32
    P              : (num_basis, D, D) float32
    combine_weight : (num_classes, num_basis) float32   (PyTorch Linear layout)
    returns        : (B, num_classes) float32
    """
    B, D = ufeat.shape
    num_classes = combine_weight.shape[0]

    # Fold the bias-free combine Linear into P:  Q[c,i,j] = sum_b W[c,b] * P[b,i,j]
    Q = jnp.einsum('cb,bij->cij', combine_weight.astype(jnp.float32),
                   P.astype(jnp.float32))                          # (C, D, D)
    # Classes along the lane dim: Qr[i, c*D + j] = Q[c, i, j]
    Qr = jnp.transpose(Q, (1, 0, 2)).reshape(D, num_classes * D)   # (D, C*D)
    # Constant segmented-reduction matrix: S[c*D + j, c'] = (c == c')
    S = jnp.repeat(jnp.eye(num_classes, dtype=jnp.float32), D, axis=0)  # (C*D, C)

    # Row tile over the batch dimension (multiple of 8, or the full B).
    if tile_b is None:
        tile_b = B if B <= 512 else 512
    tile_b = min(tile_b, B)
    if tile_b != B:
        tile_b = max(8, (tile_b // 8) * 8)
    grid = (pl.cdiv(B, tile_b),)

    return pl.pallas_call(
        _decoder_kernel,
        out_shape=jax.ShapeDtypeStruct((B, num_classes), jnp.float32),
        grid_spec=pltpu.PrefetchScalarGridSpec(
            num_scalar_prefetch=0,
            grid=grid,
            in_specs=[
                pl.BlockSpec((tile_b, D), lambda i: (i, 0)),                     # ufeat tile
                pl.BlockSpec((tile_b, D), lambda i: (i, 0)),                     # ifeat tile
                pl.BlockSpec((D, num_classes * D), lambda i: (0, 0)),            # Qr (VMEM-resident)
                pl.BlockSpec((num_classes * D, num_classes), lambda i: (0, 0)),  # S  (VMEM-resident)
            ],
            out_specs=pl.BlockSpec((tile_b, num_classes), lambda i: (i, 0)),
        ),
        compiler_params=pltpu.CompilerParams(
            dimension_semantics=("parallel",)),
    )(ufeat, ifeat, Qr, S)


def _xavier_uniform(key, shape, fan_in, fan_out, dtype=jnp.float32):
    limit = jnp.sqrt(6.0 / (fan_in + fan_out))
    return jax.random.uniform(key, shape, dtype=dtype, minval=-limit, maxval=limit)


if __name__ == "__main__":
    # Small shapes consistent with the module: B edges, D-dim features.
    B, D = 64, 32
    num_basis, num_classes = 2, 4
    TILE_B = 16  # exercises the batch grid: grid = (4,)

    key = jax.random.PRNGKey(0)
    k_u, k_i, k_p, k_w = jax.random.split(key, 4)

    ufeat = jax.random.normal(k_u, (B, D), dtype=jnp.float32)
    ifeat = jax.random.normal(k_i, (B, D), dtype=jnp.float32)

    # Parameters (xavier_uniform_, matching reset_parameters for dim > 1 params).
    P = _xavier_uniform(k_p, (num_basis, D, D), fan_in=D, fan_out=D)
    W = _xavier_uniform(k_w, (num_classes, num_basis),
                        fan_in=num_basis, fan_out=num_classes)

    out = dense_bi_decoder(ufeat, ifeat, P, W, tile_b=TILE_B)
    out = jax.block_until_ready(out)

    # Reference check in plain JAX (same math as torch.einsum + Linear, no bias).
    ref = jnp.einsum('ai,bij,aj->ab', ufeat, P, ifeat) @ W.T
    assert out.shape == (B, num_classes)
    assert jnp.allclose(out, ref, atol=2e-4, rtol=2e-4), "mismatch vs reference"

    print("KERNEL_OK")
</pallas_src>

<mosaic_0001>
module attributes {stable_mosaic.version = 11 : i64} {
  func.func @_decoder_kernel(%arg0: i32, %arg1: memref<16x32xf32, #tpu.memory_space<vmem>>, %arg2: memref<16x32xf32, #tpu.memory_space<vmem>>, %arg3: memref<32x128xf32, #tpu.memory_space<vmem>>, %arg4: memref<128x4xf32, #tpu.memory_space<vmem>>, %arg5: memref<16x4xf32, #tpu.memory_space<vmem>>) attributes {dimension_semantics = [#tpu.dimension_semantics<parallel>], iteration_bounds = array<i64: 4>, scalar_prefetch = 0 : i64, scratch_operands = 0 : i64, tpu.core_type = #tpu.core_type<tc>, window_params = [{transform_indices = @transform_0, window_bounds = array<i64: 16, 32>}, {transform_indices = @transform_1, window_bounds = array<i64: 16, 32>}, {pipeline_mode = #tpu.pipeline_mode<synchronous>, transform_indices = @transform_2, window_bounds = array<i64: 32, 128>}, {pipeline_mode = #tpu.pipeline_mode<synchronous>, transform_indices = @transform_3, window_bounds = array<i64: 128, 4>}, {transform_indices = @transform_4, window_bounds = array<i64: 16, 4>}]} {
    %c0 = arith.constant 0 : index
    %c0_0 = arith.constant 0 : index
    %0 = vector.load %arg1[%c0, %c0_0] : memref<16x32xf32, #tpu.memory_space<vmem>>, vector<16x32xf32>
    %c0_1 = arith.constant 0 : index
    %c0_2 = arith.constant 0 : index
    %1 = vector.load %arg2[%c0_1, %c0_2] : memref<16x32xf32, #tpu.memory_space<vmem>>, vector<16x32xf32>
    %c0_3 = arith.constant 0 : index
    %c0_4 = arith.constant 0 : index
    %2 = vector.load %arg3[%c0_3, %c0_4] : memref<32x128xf32, #tpu.memory_space<vmem>>, vector<32x128xf32>
    %cst = arith.constant dense<0.000000e+00> : vector<16x128xf32>
    %3 = tpu.matmul %0, %2, %cst {dimension_numbers = #tpu.dot_dimension_numbers<[1], [0], [0], [1], [0, 0, 1, 1], [], []>} : vector<16x32xf32>, vector<32x128xf32>, vector<16x128xf32> -> vector<16x128xf32>
    %4 = tpu.concatenate %1, %1, %1, %1 in 1 : vector<16x32xf32>, vector<16x32xf32>, vector<16x32xf32>, vector<16x32xf32> -> vector<16x128xf32>
    %5 = arith.mulf %3, %4 : vector<16x128xf32>
    %c0_5 = arith.constant 0 : index
    %c0_6 = arith.constant 0 : index
    %6 = vector.load %arg4[%c0_5, %c0_6] : memref<128x4xf32, #tpu.memory_space<vmem>>, vector<128x4xf32>
    %cst_7 = arith.constant dense<0.000000e+00> : vector<16x4xf32>
    %7 = tpu.matmul %5, %6, %cst_7 {dimension_numbers = #tpu.dot_dimension_numbers<[1], [0], [0], [1], [0, 0, 1, 1], [], []>} : vector<16x128xf32>, vector<128x4xf32>, vector<16x4xf32> -> vector<16x4xf32>
    %c0_8 = arith.constant 0 : index
    %c0_9 = arith.constant 0 : index
    %8 = vector.load %arg5[%c0_8, %c0_9] : memref<16x4xf32, #tpu.memory_space<vmem>>, vector<16x4xf32>
    tpu.vector_store %arg5[%c0_8, %c0_9], %7 {strides = array<i32>} : memref<16x4xf32, #tpu.memory_space<vmem>>, vector<16x4xf32>,
    return
  }
  func.func @transform_0(%arg0: i32) -> (i32, i32) {
    %c0_i32 = arith.constant 0 : i32
    %c0_i32_0 = arith.constant 0 : i32
    return %arg0, %c0_i32 : i32, i32
  }
  func.func @transform_1(%arg0: i32) -> (i32, i32) {
    %c0_i32 = arith.constant 0 : i32
    %c0_i32_0 = arith.constant 0 : i32
    return %arg0, %c0_i32 : i32, i32
  }
  func.func @transform_2(%arg0: i32) -> (i32, i32) {
    %c0_i32 = arith.constant 0 : i32
    %c0_i32_0 = arith.constant 0 : i32
    %c0_i32_1 = arith.constant 0 : i32
    return %c0_i32, %c0_i32_0 : i32, i32
  }
  func.func @transform_3(%arg0: i32) -> (i32, i32) {
    %c0_i32 = arith.constant 0 : i32
    %c0_i32_0 = arith.constant 0 : i32
    %c0_i32_1 = arith.constant 0 : i32
    return %c0_i32, %c0_i32_0 : i32, i32
  }
  func.func @transform_4(%arg0: i32) -> (i32, i32) {
    %c0_i32 = arith.constant 0 : i32
    %c0_i32_0 = arith.constant 0 : i32
    return %arg0, %c0_i32 : i32, i32
  }
}

</mosaic_0001>

<bundles_post_ra>
// kernel: tpu_custom_call.1
= control target key start
LH: loop header
LB: loop body
LE: loop exit
PB: predicated region body
PF: predicated region fallthrough
CT: control target
= control target key end

     0   :  { %s677_s15 = smov 0   ;;  %s766_s0 = inlined_call_operand.vmem [shape: f32[64,32], index: 0, kind: input, shape index: {}]   ;;  %s767_s1 = inlined_call_operand.vmem [shape: f32[64,32], index: 1, kind: input, shape index: {}]   ;;  %s768_s2 = inlined_call_operand.vmem [shape: f32[32,128], index: 2, kind: input, shape index: {}]   ;;  %s769_s3 = inlined_call_operand.vmem [shape: f32[128,4], index: 3, kind: input, shape index: {}]   ;;  %s770_s4 = inlined_call_operand.vmem [shape: f32[64,4], index: 4, kind: output, shape index: {}]  }
   0x1 LB: > { %s505_s16 = sadd.s32 4294967295, %s647_s15   ;;  %p509_p0 = scmp.ge.s32.totalorder %s647_s15, 1  ;;  %s647_s15 = sphi %s677_s15, %s14_s15  }
   0x2   : > { %p174_p1 = scmp.lt.s32.totalorder %s647_s15, 5 }
   0x4   : > { %p175_p2 = pnand %p509_p0, %p174_p1 }
   0x5   : > { %v227_v0 = vld [vmem:[%s768_s2] sm:$0xff] (!%p175_p2)  ;;  %v228_v1 = vld [vmem:[%s768_s2 + $0x8] sm:$0xff] (!%p175_p2)  ;;  %v229_v2 = vld [vmem:[%s768_s2 + $0x10] sm:$0xff] (!%p175_p2)  ;;  %s510_s23 = sshll.u32 (!%p175_p2), %s505_s16, 1  ;;  %vm231_vm0 = vcmask (!%p175_p2), 261120   ;;  %s649_s24 = smov (!%p175_p2), 32  }
   0x6   : > { %178 = sbr.rel (%p175_p2) target bundleno = 449 (0x1c1), region = 36  ;;  %v590_v3 = vpack.c.bf16 (!%p175_p2), %v228_v1, %v227_v0  ;;  %v230_v4 = vld [vmem:[%s768_s2 + $0x18] sm:$0xff] (!%p175_p2)  ;;  %p206_p3 = scmp.lt.s32.totalorder (!%p175_p2), %s510_s23, 7  ;;  %v343_v5 = vld [vmem:[%s769_s3] sm:$0xff] (!%p175_p2)  ;;  %v344_v6 = vld [vmem:[%s769_s3 + $0x8] sm:$0xff] (!%p175_p2)  ;;  %vm335_vm1 = vcmask (!%p175_p2), 523264  }
   0x7   : > { %v594_v7 = vpack.c.bf16 (!%p175_p2), %v230_v4, %v229_v2  ;;  %v598_v8 = vpack.c.bf16 (!%p175_p2), %v344_v6, %v343_v5  ;;  %v345_v9 = vld [vmem:[%s769_s3 + $0x10] sm:$0xff] (!%p175_p2)  ;;  %v346_v10 = vld [vmem:[%s769_s3 + $0x18] sm:$0xff] (!%p175_p2)  ;;  %v347_v12 = vld [vmem:[%s769_s3 + $0x20] sm:$0xff] (!%p175_p2)  ;;  %s650_s25 = smov (!%p175_p2), 64   ;;  %s651_s8 = smov (!%p175_p2), 96   ;;  %vm338_vm2 = vcmask (!%p175_p2), 785408  }
   0x8   : > { %591 = vmatprep.subr.bf16.mxu0 (!%p175_p2), %v590_v3  ;;  %v602_v11 = vpack.c.bf16 (!%p175_p2), %v346_v10, %v345_v9  ;;  %v348_v13 = vld [vmem:[%s769_s3 + $0x28] sm:$0xff] (!%p175_p2)  ;;  %v349_v18 = vld [vmem:[%s769_s3 + $0x30] sm:$0xff] (!%p175_p2)  ;;  %v350_v19 = vld [vmem:[%s769_s3 + $0x38] sm:$0xff] (!%p175_p2)  ;;  %vm434_vm3 = vcmask (!%p175_p2), 31744  }
   0x9   : > { %593 = vmatpush3.bf16.msra.mxu0 (!%p175_p2), %v590_v3  ;;  %599 = vmatprep.subr.bf16.mxu1 (!%p175_p2), %v598_v8  ;;  %v606_v16 = vpack.c.bf16 (!%p175_p2), %v348_v13, %v347_v12  ;;  %v610_v21 = vpack.c.bf16 (!%p175_p2), %v350_v19, %v349_v18  ;;  %v351_v22 = vld [vmem:[%s769_s3 + $0x40] sm:$0xff] (!%p175_p2)  ;;  %v352_v23 = vld [vmem:[%s769_s3 + $0x48] sm:$0xff] (!%p175_p2)  ;;  %v353_v25 = vld [vmem:[%s769_s3 + $0x50] sm:$0xff] (!%p175_p2) }
   0xa   : > { %595 = vmatprep.subr.bf16.mxu0 (!%p175_p2), %v594_v7  ;;  %601 = vmatpush3.bf16.msra.mxu1 (!%p175_p2), %v598_v8  ;;  %v614_v24 = vpack.c.bf16 (!%p175_p2), %v352_v23, %v351_v22  ;;  %v354_v26 = vld [vmem:[%s769_s3 + $0x58] sm:$0xff] (!%p175_p2)  ;;  %v355_v28 = vld [vmem:[%s769_s3 + $0x60] sm:$0xff] (!%p175_p2)  ;;  %v356_v29 = vld [vmem:[%s769_s3 + $0x68] sm:$0xff] (!%p175_p2) }
   0xb   : > { %603 = vmatprep.subr.bf16.mxu1 (!%p175_p2), %v602_v11  ;;  %v618_v27 = vpack.c.bf16 (!%p175_p2), %v354_v26, %v353_v25  ;;  %v622_v30 = vpack.c.bf16 (!%p175_p2), %v356_v29, %v355_v28  ;;  %v357_v31 = vld [vmem:[%s769_s3 + $0x70] sm:$0xff] (!%p175_p2)  ;;  %v358_v32 = vld [vmem:[%s769_s3 + $0x78] sm:$0xff] (!%p175_p2) }
   0xc   : > { %v626_v33 = vpack.c.bf16 (!%p175_p2), %v358_v32, %v357_v31 }
   0xd   : > { %s772_s23 = smov (!%p206_p3, %s510_s23), 7  ;;  %597 = vmatpush3.bf16.msra.mxu0 %v594_v7 }
   0xe   : > { %s715_s12 = sshll.u32 %s772_s23, 3  ;;  %605 = vmatpush3.bf16.msra.mxu1 %v602_v11 }
   0xf   : > { %s209_s16 = scalar_lea.vmem %s766_s0, %s715_s12  ;;  %s215_s19 = scalar_lea.vmem %s767_s1, %s715_s12  ;;  %607 = vmatprep.subr.bf16.mxu1 %v606_v16 }
  0x10   : > { %v223_v14 = vld [vmem:[%s209_s16] sm:$0xff]  ;;  %v224_v17 = vld [vmem:[%s209_s16 + $0x8] sm:$0xff]  ;;  %s221_s21 = scalar_lea.vmem %s770_s4, %s715_s12 }
  0x11   : > { %v225_v15 = vld [vmem:[%s215_s19] sm:$0xff]  ;;  %552 = vmatprep.mubr.msk.f32.mxu0 %vm231_vm0, %v223_v14  ;;  %v226_v20 = vld [vmem:[%s215_s19 + $0x8] sm:$0xff] }
  0x12   : > { %315 = vrot.lane.b32.xlu0 %v225_v15, %s649_s24  ;;  %321 = vrot.lane.b32.xlu1 %v225_v15, %s650_s25 }
  0x13   : > { %553 = vmatmul.mubr.msk.f32.vlgmr.msra.gmra.mrb[0].mxu0 %vm231_vm0, %v224_v17  ;;  %609 = vmatpush3.bf16.msra.mxu1 %v606_v16 }
  0x14   : > { %611 = vmatprep.subr.bf16.mxu1 %v610_v21 }
  0x16   : > { %317 = vrot.lane.b32.xlu0 %v226_v20, %s649_s24  ;;  %323 = vrot.lane.b32.xlu1 %v226_v20, %s650_s25 }
  0x17   : > { %613 = vmatpush3.bf16.msra.mxu1 %v610_v21 }
  0x18   : > { %615 = vmatprep.subr.bf16.mxu1 %v614_v24 }
  0x1a   : > { %327 = vrot.lane.b32.xlu0 %v225_v15, %s651_s8  ;;  %329 = vrot.lane.b32.xlu1 %v226_v20, %s651_s8 }
  0x1b   : > { %617 = vmatpush3.bf16.msra.mxu1 %v614_v24 }
  0x1c   : > { %619 = vmatprep.subr.bf16.mxu1 %v618_v27 }
  0x1f   : > { %621 = vmatpush3.bf16.msra.mxu1 %v618_v27 }
  0x20   : > { %623 = vmatprep.subr.bf16.mxu1 %v622_v30 }
  0x23   : > { %625 = vmatpush3.bf16.msra.mxu1 %v622_v30 }
  0x24   : > { %627 = vmatprep.subr.bf16.mxu1 %v626_v33 }
  0x27   : > { %629 = vmatpush3.bf16.msra.mxu1 %v626_v33 }
  0x84   : > { %v322_v34 = vpop.permute.xlu1 %321  ;;  %v316_v35 = vpop.permute.xlu0 %315 }
  0x85   : > { %v333_v39 = vsel %vm231_vm0, %v225_v15, %v316_v35 }
  0x86   : > { %v336_v42 = vsel %vm335_vm1, %v333_v39, %v322_v34 }
  0x88   : > { %v324_v36 = vpop.permute.xlu1 %323  ;;  %v318_v37 = vpop.permute.xlu0 %317 }
  0x89   : > { %v334_v38 = vsel %vm231_vm0, %v226_v20, %v318_v37 }
  0x8a   : > { %v337_v40 = vsel %vm335_vm1, %v334_v38, %v324_v36 }
  0x8c   : > { %v330_v41 = vpop.permute.xlu1 %329  ;;  %v328_v43 = vpop.permute.xlu0 %327 }
  0x8d   : > { %v340_v45 = vsel %vm338_vm2, %v337_v40, %v330_v41  ;;  %v339_v47 = vsel %vm338_vm2, %v336_v42, %v328_v43 }
  0xe6   : > { %v554_v44 = vpop.f32.mrb[0].mxu0 }
  0xe7   : > { %v304_v46 = vpop.f32.mrb[1].mxu0  ;;  %v342_v49 = vmul.f32 %v554_v44, %v340_v45 }
  0xe8   : > { %v341_v48 = vmul.f32 %v339_v47, %v304_v46 }
  0xea   : > { %587 = vmatprep.mubr.f32.mxu1 %v341_v48 }
  0xeb   : > { %588 = vmatmul.mubr.f32.vlgmr.msra.gmra.mrb[0].mxu1 %v342_v49 }
 0x1be   : > { %v589_v50 = vpop.f32.mrb[0].mxu1 }
 0x1bf   : > { %v425_v51 = vpop.f32.mrb[1].mxu1  ;;  %436 = vst.msk [vmem:[%s221_s21 + $0x8] sm:$0xff] %vm434_vm3, %v589_v50 }
 0x1c0   : > { %435 = vst.msk [vmem:[%s221_s21] sm:$0xff] %vm434_vm3, %v425_v51 }
 0x1c1 PF: > { %s14_s15 = sadd.s32 1, %s647_s15  }
 0x1c2   : > { %p11_p4 = scmp.ge.s32.totalorder %s14_s15, 6  }
 0x1c4   :  { %13 = sbr.rel (!%p11_p4) target bundleno = 1 (0x1), region = 69 }

</bundles_post_ra>
